<compile_context>
chip_gen: v7x
topology: tpu7x:2x2x1
jax: 0.10.0
libtpu: 0.0.40
codegen_flags: <defaults>
</compile_context>

<pallas_src>
import jax
import jax.numpy as jnp
from jax import lax
from jax.experimental import pallas as pl
from jax.experimental.pallas import tpu as pltpu


def _round_up(x, m):
    return ((x + m - 1) // m) * m


def _pick_tile_s(S):
    """Tile S so the output lane dim is either full-S or a multiple of 128."""
    if S <= 128:
        return S
    if S % 128 == 0:
        return 128
    return S  # fallback: one (full-S) block per batch


# ---------------------------------------------------------------------------
# Pallas kernel 1: squared pairwise distances   dist[s, n] = ||c_s - x_n||^2
#   new_xyz block: (TILE_S, 3)   xyz block: (3, N)  -> N stays on lanes.
# ---------------------------------------------------------------------------
def _sqdist_kernel(new_xyz_ref, xyz_ref, out_ref):
    s = new_xyz_ref[...].astype(jnp.float32)                       # (TILE_S, 3)
    x = xyz_ref[...].astype(jnp.float32)                           # (3, N)
    cross = jnp.dot(s, x, preferred_element_type=jnp.float32)      # (TILE_S, N)
    s2 = jnp.sum(s * s, axis=-1, keepdims=True)                    # (TILE_S, 1)
    x2 = jnp.sum(x * x, axis=0, keepdims=True)                     # (1, N) sublane reduce
    out_ref[...] = s2 - 2.0 * cross + x2


def pallas_square_distance(new_xyz, xyz_cf):
    """new_xyz: [B, S, 3], xyz_cf: [B, 3, N] (channels-first) -> [B, S, N] f32."""
    B, S, _ = new_xyz.shape
    _, _, N = xyz_cf.shape
    tile_s = _pick_tile_s(S)
    grid = (B, S // tile_s)
    est = 2 * (tile_s * 3 + 3 * N + tile_s * N) * 4
    vmem_limit = int(min(max(2 * est, 32 << 20), 48 << 20))
    return pl.pallas_call(
        _sqdist_kernel,
        out_shape=jax.ShapeDtypeStruct((B, S, N), jnp.float32),
        grid=grid,
        in_specs=[
            pl.BlockSpec((None, tile_s, 3), lambda b, st: (b, st, 0)),
            pl.BlockSpec((None, 3, N), lambda b, st: (b, 0, 0)),
        ],
        out_specs=pl.BlockSpec((None, tile_s, N), lambda b, st: (b, st, 0)),
        compiler_params=pltpu.CompilerParams(
            dimension_semantics=("parallel", "parallel"),
            vmem_limit_bytes=vmem_limit),
    )(new_xyz.astype(jnp.float32), xyz_cf.astype(jnp.float32))


# ---------------------------------------------------------------------------
# Pallas kernel 2: per-scale MLP (1x1 conv + folded BN + ReLU) + max over K.
#   Input block: (TILE_S*K, C0p) channels-last (matmul-ready, pre-flattened).
#   Output block: (c_out, TILE_S)  -> lane-dense stores into [B, c_out, S].
# ---------------------------------------------------------------------------
def _make_msg_mlp_kernel(num_layers, tile_s, K, compute_dtype):
    def kernel(x_ref, *rest):
        out_ref = rest[-1]
        params = rest[:-1]                          # w0, b0, w1, b1, ...
        h = x_ref[...]                              # (TILE_S*K, C0p), compute dtype
        for j in range(num_layers):
            w = params[2 * j][...]                  # (C_in, C_out), compute dtype
            b = params[2 * j + 1][...]              # (1, C_out), f32
            acc = jnp.dot(h.astype(compute_dtype), w,
                          preferred_element_type=jnp.float32)
            h = jnp.maximum(acc + b, 0.0)           # bias + ReLU in f32
        c_out = h.shape[-1]
        h3 = h.reshape(tile_s, K, c_out)
        red = jnp.max(h3, axis=1)                   # (TILE_S, c_out) max over K
        out_ref[...] = jnp.transpose(red)           # small XLU transpose -> lane-dense
    return kernel


def msg_mlp_max(grouped_flat, weights, biases, S, K, *, compute_dtype=jnp.bfloat16):
    """grouped_flat: [B, S*K, C0p] -> [B, c_out, S] (MLP stack then max over K)."""
    B, SK, C0p = grouped_flat.shape
    assert SK == S * K
    L = len(weights)
    c_out = int(weights[-1].shape[1])
    tile_s = _pick_tile_s(S)
    grid = (B, S // tile_s)
    kernel = _make_msg_mlp_kernel(L, tile_s, K, compute_dtype)

    in_specs = [pl.BlockSpec((None, tile_s * K, C0p), lambda b, st: (b, st, 0))]
    param_inputs = []
    for w, bb in zip(weights, biases):
        in_specs.append(pl.BlockSpec(w.shape, lambda b, st: (0, 0)))
        in_specs.append(pl.BlockSpec(bb.shape, lambda b, st: (0, 0)))
        param_inputs += [w.astype(compute_dtype), bb.astype(jnp.float32)]

    itemsize = jnp.dtype(compute_dtype).itemsize
    c_max = max(int(max(w.shape)) for w in weights)
    est = (2 * tile_s * K * C0p * itemsize          # double-buffered input block
           + 2 * tile_s * K * c_max * 4             # two live f32 activations
           + 2 * c_out * tile_s * 4                 # double-buffered output block
           + 2 * sum(int(w.size) * itemsize + int(bb.size) * 4
                     for w, bb in zip(weights, biases)))
    vmem_limit = int(min(max(2 * est, 32 << 20), 48 << 20))

    return pl.pallas_call(
        kernel,
        out_shape=jax.ShapeDtypeStruct((B, c_out, S), jnp.float32),
        grid=grid,
        in_specs=in_specs,
        out_specs=pl.BlockSpec((None, c_out, tile_s), lambda b, st: (b, 0, st)),
        compiler_params=pltpu.CompilerParams(
            dimension_semantics=("parallel", "parallel"),
            vmem_limit_bytes=vmem_limit),
    )(grouped_flat.astype(compute_dtype), *param_inputs)


# ---------------------------------------------------------------------------
# Plain-JAX glue: FPS, gathers, ball query (irregular / sequential ops)
# ---------------------------------------------------------------------------
def farthest_point_sample(xyz, npoint):
    """xyz: [B, N, 3] -> centroid indices [B, npoint] (int32)."""
    # TODO(synk): sequential FPS stays in XLA; a VMEM-resident Pallas kernel would
    # avoid re-reading xyz from HBM on each of the npoint iterations.
    B, N, _ = xyz.shape

    def body(i, state):
        centroids, distance, farthest = state
        centroids = centroids.at[:, i].set(farthest)
        centroid = jnp.take_along_axis(xyz, farthest[:, None, None], axis=1)  # [B,1,3]
        dist = jnp.sum((xyz - centroid) ** 2, axis=-1)                        # [B,N]
        distance = jnp.minimum(distance, dist)
        farthest = jnp.argmax(distance, axis=-1).astype(jnp.int32)
        return centroids, distance, farthest

    centroids = jnp.zeros((B, npoint), dtype=jnp.int32)
    distance = jnp.full((B, N), 1e10, dtype=jnp.float32)
    # TODO(synk): PyTorch seeds FPS with torch.randint; use deterministic index 0 here.
    farthest = jnp.zeros((B,), dtype=jnp.int32)
    centroids, _, _ = lax.fori_loop(0, npoint, body, (centroids, distance, farthest))
    return centroids


def index_points(points, idx):
    """points: [B, N, C], idx: [B, ...] -> [B, ..., C]."""
    B = points.shape[0]
    C = points.shape[-1]
    idx_flat = idx.reshape(B, -1)
    out = jnp.take_along_axis(points, idx_flat[..., None], axis=1)
    return out.reshape(idx.shape + (C,))


def query_ball_point(radius, nsample, sqrdists, N):
    """sqrdists: [B, S, N] -> group indices [B, S, nsample] (smallest indices in ball)."""
    idx = jnp.arange(N, dtype=jnp.int32)
    # Smallest nsample valid indices == largest nsample of the negated (masked) indices.
    neg_idx = jnp.where(sqrdists > radius ** 2, jnp.int32(-N), -idx)
    vals, _ = lax.top_k(neg_idx, nsample)            # descending -> indices ascending
    group_idx = -vals                                # padded with N where ball is short
    group_first = group_idx[:, :, 0:1]
    group_idx = jnp.where(group_idx == N, group_first, group_idx)
    return group_idx


# ---------------------------------------------------------------------------
# The module
# ---------------------------------------------------------------------------
class PointNetSetAbstractionMsg:
    def __init__(self, npoint, radius_list, nsample_list, in_channel, mlp_list, key,
                 compute_dtype=jnp.bfloat16):
        self.npoint = npoint
        self.radius_list = radius_list
        self.nsample_list = nsample_list
        self.compute_dtype = compute_dtype
        self.c0 = in_channel + 3
        self.c0p = _round_up(self.c0, 8)             # pad input channels for the MXU
        self.weights = []   # per scale: list of [C_in(_padded), C_out]
        self.biases = []    # per scale: list of [1, C_out]
        # BatchNorm2d applied in eval mode with fresh stats
        # (running_mean=0, running_var=1, gamma=1, beta=0), folded into the conv.
        # TODO(synk): training-mode BN (batch statistics) needs a cross-tile reduction.
        bn_scale = 1.0 / jnp.sqrt(1.0 + 1e-5)
        for i in range(len(mlp_list)):
            ws, bs = [], []
            last_channel = self.c0
            for j, out_channel in enumerate(mlp_list[i]):
                key, wk, bk = jax.random.split(key, 3)
                w = jax.random.normal(wk, (last_channel, out_channel), jnp.float32)
                w = w * (1.0 / jnp.sqrt(last_channel))
                b = 0.01 * jax.random.normal(bk, (1, out_channel), jnp.float32)
                w = w * bn_scale
                b = b * bn_scale
                if j == 0 and self.c0p != self.c0:   # zero-pad rows for padded channels
                    w = jnp.concatenate(
                        [w, jnp.zeros((self.c0p - self.c0, out_channel), jnp.float32)],
                        axis=0)
                ws.append(w)
                bs.append(b)
                last_channel = out_channel
            self.weights.append(ws)
            self.biases.append(bs)

    def __call__(self, xyz, points):
        """xyz: [B, 3, N], points: [B, D, N] or None
           -> new_xyz [B, 3, S], new_points_concat [B, sum(mlp[-1]), S]."""
        xyz_t = jnp.transpose(xyz, (0, 2, 1))                            # [B, N, 3]
        points_t = jnp.transpose(points, (0, 2, 1)) if points is not None else None
        B, N, _ = xyz_t.shape
        S = self.npoint

        fps_idx = farthest_point_sample(xyz_t, S)                        # [B, S]
        new_xyz = index_points(xyz_t, fps_idx)                           # [B, S, 3]

        # Distance matrix once for all radius scales (Pallas; xyz kept [B,3,N]).
        sqrdists = pallas_square_distance(new_xyz, xyz)                  # [B, S, N]

        new_points_list = []
        for i, radius in enumerate(self.radius_list):
            K = self.nsample_list[i]
            group_idx = query_ball_point(radius, K, sqrdists, N)         # [B, S, K]
            grouped_xyz = index_points(xyz_t, group_idx)                 # [B, S, K, 3]
            grouped_xyz = grouped_xyz - new_xyz[:, :, None, :]
            if points_t is not None:
                grouped_points = index_points(points_t, group_idx)       # [B, S, K, D]
                grouped_points = jnp.concatenate([grouped_points, grouped_xyz], axis=-1)
            else:
                grouped_points = grouped_xyz
            assert grouped_points.shape[-1] == self.c0
            pad = self.c0p - self.c0
            if pad:
                grouped_points = jnp.pad(
                    grouped_points, ((0, 0), (0, 0), (0, 0), (0, pad)))
            grouped_flat = grouped_points.reshape(B, S * K, self.c0p)    # matmul-ready
            # Fused MLP(1x1 conv + BN + ReLU) stack + max over K, in Pallas.
            new_points = msg_mlp_max(grouped_flat, self.weights[i], self.biases[i],
                                     S, K, compute_dtype=self.compute_dtype)
            new_points_list.append(new_points)                           # [B, C', S]

        new_xyz_out = jnp.transpose(new_xyz, (0, 2, 1))                  # [B, 3, S]
        new_points_concat = jnp.concatenate(new_points_list, axis=1)
        return new_xyz_out, new_points_concat


# ---------------------------------------------------------------------------
if __name__ == "__main__":
    key = jax.random.PRNGKey(0)
    k_xyz, k_pts, k_par = jax.random.split(key, 3)

    B, N, D = 2, 32, 4
    npoint = 8
    radius_list = [0.5, 1.0]
    nsample_list = [8, 16]
    mlp_list = [[16, 32], [16, 32]]

    xyz = jax.random.normal(k_xyz, (B, 3, N), dtype=jnp.float32)
    points = jax.random.normal(k_pts, (B, D, N), dtype=jnp.float32)

    module = PointNetSetAbstractionMsg(npoint, radius_list, nsample_list,
                                       D, mlp_list, k_par)
    fwd = jax.jit(module.__call__)
    new_xyz, new_points = fwd(xyz, points)
    jax.block_until_ready((new_xyz, new_points))

    assert new_xyz.shape == (B, 3, npoint), new_xyz.shape
    assert new_points.shape == (B, sum(m[-1] for m in mlp_list), npoint), new_points.shape
    assert jnp.all(jnp.isfinite(new_xyz)) and jnp.all(jnp.isfinite(new_points))
    print("KERNEL_OK")
</pallas_src>

<mosaic_0001>
module attributes {stable_mosaic.version = 11 : i64} {
  func.func @_sqdist_kernel(%arg0: i32, %arg1: i32, %arg2: memref<1x8x3xf32, #tpu.memory_space<vmem>>, %arg3: memref<1x3x32xf32, #tpu.memory_space<vmem>>, %arg4: memref<1x8x32xf32, #tpu.memory_space<vmem>>) attributes {dimension_semantics = [#tpu.dimension_semantics<parallel>, #tpu.dimension_semantics<parallel>], iteration_bounds = array<i64: 2, 1>, scalar_prefetch = 0 : i64, scratch_operands = 0 : i64, tpu.core_type = #tpu.core_type<tc>, window_params = [{transform_indices = @transform_0, window_bounds = array<i64: 1, 8, 3>}, {transform_indices = @transform_1, window_bounds = array<i64: 1, 3, 32>}, {transform_indices = @transform_2, window_bounds = array<i64: 1, 8, 32>}]} {
    %c0 = arith.constant 0 : index
    %c0_0 = arith.constant 0 : index
    %c0_1 = arith.constant 0 : index
    %0 = vector.load %arg2[%c0, %c0_0, %c0_1] : memref<1x8x3xf32, #tpu.memory_space<vmem>>, vector<1x8x3xf32>
    %1 = vector.shape_cast %0 : vector<1x8x3xf32> to vector<8x3xf32>
    %c0_2 = arith.constant 0 : index
    %c0_3 = arith.constant 0 : index
    %c0_4 = arith.constant 0 : index
    %2 = vector.load %arg3[%c0_2, %c0_3, %c0_4] : memref<1x3x32xf32, #tpu.memory_space<vmem>>, vector<1x3x32xf32>
    %3 = vector.shape_cast %2 : vector<1x3x32xf32> to vector<3x32xf32>
    %cst = arith.constant dense<0.000000e+00> : vector<8x32xf32>
    %4 = tpu.matmul %1, %3, %cst {dimension_numbers = #tpu.dot_dimension_numbers<[1], [0], [0], [1], [0, 0, 1, 1], [], []>} : vector<8x3xf32>, vector<3x32xf32>, vector<8x32xf32> -> vector<8x32xf32>
    %5 = arith.mulf %1, %1 : vector<8x3xf32>
    %cst_5 = arith.constant dense<0.000000e+00> : vector<8xf32>
    %6 = vector.multi_reduction <add>, %5, %cst_5 [1] : vector<8x3xf32> to vector<8xf32>
    %7 = vector.shape_cast %6 : vector<8xf32> to vector<8x1xf32>
    %8 = arith.mulf %3, %3 : vector<3x32xf32>
    %cst_6 = arith.constant dense<0.000000e+00> : vector<32xf32>
    %9 = vector.multi_reduction <add>, %8, %cst_6 [0] : vector<3x32xf32> to vector<32xf32>
    %10 = vector.shape_cast %9 : vector<32xf32> to vector<1x32xf32>
    %cst_7 = arith.constant 2.000000e+00 : f32
    %11 = vector.broadcast %cst_7 : f32 to vector<8x32xf32>
    %12 = arith.mulf %11, %4 : vector<8x32xf32>
    %13 = vector.broadcast %7 : vector<8x1xf32> to vector<8x32xf32>
    %14 = arith.subf %13, %12 : vector<8x32xf32>
    %15 = vector.broadcast %10 : vector<1x32xf32> to vector<8x32xf32>
    %16 = arith.addf %14, %15 : vector<8x32xf32>
    %c0_8 = arith.constant 0 : index
    %c0_9 = arith.constant 0 : index
    %c0_10 = arith.constant 0 : index
    %17 = vector.load %arg4[%c0_8, %c0_9, %c0_10] : memref<1x8x32xf32, #tpu.memory_space<vmem>>, vector<1x8x32xf32>
    %18 = vector.shape_cast %17 : vector<1x8x32xf32> to vector<8x32xf32>
    %19 = vector.shape_cast %16 : vector<8x32xf32> to vector<1x8x32xf32>
    tpu.vector_store %arg4[%c0_8, %c0_9, %c0_10], %19 {strides = array<i32>} : memref<1x8x32xf32, #tpu.memory_space<vmem>>, vector<1x8x32xf32>,
    return
  }
  func.func @transform_0(%arg0: i32, %arg1: i32) -> (i32, i32, i32) {
    %c0_i32 = arith.constant 0 : i32
    %c0_i32_0 = arith.constant 0 : i32
    return %arg0, %arg1, %c0_i32 : i32, i32, i32
  }
  func.func @transform_1(%arg0: i32, %arg1: i32) -> (i32, i32, i32) {
    %c0_i32 = arith.constant 0 : i32
    %c0_i32_0 = arith.constant 0 : i32
    %c0_i32_1 = arith.constant 0 : i32
    return %arg0, %c0_i32, %c0_i32_0 : i32, i32, i32
  }
  func.func @transform_2(%arg0: i32, %arg1: i32) -> (i32, i32, i32) {
    %c0_i32 = arith.constant 0 : i32
    %c0_i32_0 = arith.constant 0 : i32
    return %arg0, %arg1, %c0_i32 : i32, i32, i32
  }
}

module attributes {stable_mosaic.version = 11 : i64} {
  func.func @kernel(%arg0: i32, %arg1: i32, %arg2: memref<1x64x8xbf16, #tpu.memory_space<vmem>>, %arg3: memref<8x16xbf16, #tpu.memory_space<vmem>>, %arg4: memref<1x16xf32, #tpu.memory_space<vmem>>, %arg5: memref<16x32xbf16, #tpu.memory_space<vmem>>, %arg6: memref<1x32xf32, #tpu.memory_space<vmem>>, %arg7: memref<1x32x8xf32, #tpu.memory_space<vmem>>) attributes {dimension_semantics = [#tpu.dimension_semantics<parallel>, #tpu.dimension_semantics<parallel>], iteration_bounds = array<i64: 2, 1>, scalar_prefetch = 0 : i64, scratch_operands = 0 : i64, tpu.core_type = #tpu.core_type<tc>, window_params = [{transform_indices = @transform_0, window_bounds = array<i64: 1, 64, 8>}, {pipeline_mode = #tpu.pipeline_mode<synchronous>, transform_indices = @transform_1, window_bounds = array<i64: 8, 16>}, {pipeline_mode = #tpu.pipeline_mode<synchronous>, transform_indices = @transform_2, window_bounds = array<i64: 1, 16>}, {pipeline_mode = #tpu.pipeline_mode<synchronous>, transform_indices = @transform_3, window_bounds = array<i64: 16, 32>}, {pipeline_mode = #tpu.pipeline_mode<synchronous>, transform_indices = @transform_4, window_bounds = array<i64: 1, 32>}, {transform_indices = @transform_5, window_bounds = array<i64: 1, 32, 8>}]} {
    %c0 = arith.constant 0 : index
    %c0_0 = arith.constant 0 : index
    %c0_1 = arith.constant 0 : index
    %0 = vector.load %arg2[%c0, %c0_0, %c0_1] : memref<1x64x8xbf16, #tpu.memory_space<vmem>>, vector<1x64x8xbf16>
    %1 = vector.shape_cast %0 : vector<1x64x8xbf16> to vector<64x8xbf16>
    %c0_2 = arith.constant 0 : index
    %c0_3 = arith.constant 0 : index
    %2 = vector.load %arg3[%c0_2, %c0_3] : memref<8x16xbf16, #tpu.memory_space<vmem>>, vector<8x16xbf16>
    %c0_4 = arith.constant 0 : index
    %c0_5 = arith.constant 0 : index
    %3 = vector.load %arg4[%c0_4, %c0_5] : memref<1x16xf32, #tpu.memory_space<vmem>>, vector<1x16xf32>
    %cst = arith.constant dense<0.000000e+00> : vector<64x16xf32>
    %4 = tpu.matmul %1, %2, %cst {dimension_numbers = #tpu.dot_dimension_numbers<[1], [0], [0], [1], [0, 0, 1, 1], [], []>} : vector<64x8xbf16>, vector<8x16xbf16>, vector<64x16xf32> -> vector<64x16xf32>
    %5 = vector.broadcast %3 : vector<1x16xf32> to vector<64x16xf32>
    %6 = arith.addf %4, %5 : vector<64x16xf32>
    %cst_6 = arith.constant 0.000000e+00 : f32
    %7 = vector.broadcast %cst_6 : f32 to vector<64x16xf32>
    %8 = arith.maximumf %6, %7 : vector<64x16xf32>
    %c0_7 = arith.constant 0 : index
    %c0_8 = arith.constant 0 : index
    %9 = vector.load %arg5[%c0_7, %c0_8] : memref<16x32xbf16, #tpu.memory_space<vmem>>, vector<16x32xbf16>
    %c0_9 = arith.constant 0 : index
    %c0_10 = arith.constant 0 : index
    %10 = vector.load %arg6[%c0_9, %c0_10] : memref<1x32xf32, #tpu.memory_space<vmem>>, vector<1x32xf32>
    %11 = arith.truncf %8 : vector<64x16xf32> to vector<64x16xbf16>
    %cst_11 = arith.constant dense<0.000000e+00> : vector<64x32xf32>
    %12 = tpu.matmul %11, %9, %cst_11 {dimension_numbers = #tpu.dot_dimension_numbers<[1], [0], [0], [1], [0, 0, 1, 1], [], []>} : vector<64x16xbf16>, vector<16x32xbf16>, vector<64x32xf32> -> vector<64x32xf32>
    %13 = vector.broadcast %10 : vector<1x32xf32> to vector<64x32xf32>
    %14 = arith.addf %12, %13 : vector<64x32xf32>
    %cst_12 = arith.constant 0.000000e+00 : f32
    %15 = vector.broadcast %cst_12 : f32 to vector<64x32xf32>
    %16 = arith.maximumf %14, %15 : vector<64x32xf32>
    %17 = vector.shape_cast %16 : vector<64x32xf32> to vector<8x8x32xf32>
    %cst_13 = arith.constant dense<0xFF800000> : vector<8x32xf32>
    %18 = vector.multi_reduction <maximumf>, %17, %cst_13 [1] : vector<8x8x32xf32> to vector<8x32xf32>
    %19 = tpu.transpose %18, [1, 0] : vector<8x32xf32> -> vector<32x8xf32>
    %c0_14 = arith.constant 0 : index
    %c0_15 = arith.constant 0 : index
    %c0_16 = arith.constant 0 : index
    %20 = vector.load %arg7[%c0_14, %c0_15, %c0_16] : memref<1x32x8xf32, #tpu.memory_space<vmem>>, vector<1x32x8xf32>
    %21 = vector.shape_cast %20 : vector<1x32x8xf32> to vector<32x8xf32>
    %22 = vector.shape_cast %19 : vector<32x8xf32> to vector<1x32x8xf32>
    tpu.vector_store %arg7[%c0_14, %c0_15, %c0_16], %22 {strides = array<i32>} : memref<1x32x8xf32, #tpu.memory_space<vmem>>, vector<1x32x8xf32>,
    return
  }
  func.func @transform_0(%arg0: i32, %arg1: i32) -> (i32, i32, i32) {
    %c0_i32 = arith.constant 0 : i32
    %c0_i32_0 = arith.constant 0 : i32
    return %arg0, %arg1, %c0_i32 : i32, i32, i32
  }
  func.func @transform_1(%arg0: i32, %arg1: i32) -> (i32, i32) {
    %c0_i32 = arith.constant 0 : i32
    %c0_i32_0 = arith.constant 0 : i32
    %c0_i32_1 = arith.constant 0 : i32
    return %c0_i32, %c0_i32_0 : i32, i32
  }
  func.func @transform_2(%arg0: i32, %arg1: i32) -> (i32, i32) {
    %c0_i32 = arith.constant 0 : i32
    %c0_i32_0 = arith.constant 0 : i32
    %c0_i32_1 = arith.constant 0 : i32
    return %c0_i32, %c0_i32_0 : i32, i32
  }
  func.func @transform_3(%arg0: i32, %arg1: i32) -> (i32, i32) {
    %c0_i32 = arith.constant 0 : i32
    %c0_i32_0 = arith.constant 0 : i32
    %c0_i32_1 = arith.constant 0 : i32
    return %c0_i32, %c0_i32_0 : i32, i32
  }
  func.func @transform_4(%arg0: i32, %arg1: i32) -> (i32, i32) {
    %c0_i32 = arith.constant 0 : i32
    %c0_i32_0 = arith.constant 0 : i32
    %c0_i32_1 = arith.constant 0 : i32
    return %c0_i32, %c0_i32_0 : i32, i32
  }
  func.func @transform_5(%arg0: i32, %arg1: i32) -> (i32, i32, i32) {
    %c0_i32 = arith.constant 0 : i32
    %c0_i32_0 = arith.constant 0 : i32
    return %arg0, %c0_i32, %arg1 : i32, i32, i32
  }
}

module attributes {stable_mosaic.version = 11 : i64} {
  func.func @kernel(%arg0: i32, %arg1: i32, %arg2: memref<1x128x8xbf16, #tpu.memory_space<vmem>>, %arg3: memref<8x16xbf16, #tpu.memory_space<vmem>>, %arg4: memref<1x16xf32, #tpu.memory_space<vmem>>, %arg5: memref<16x32xbf16, #tpu.memory_space<vmem>>, %arg6: memref<1x32xf32, #tpu.memory_space<vmem>>, %arg7: memref<1x32x8xf32, #tpu.memory_space<vmem>>) attributes {dimension_semantics = [#tpu.dimension_semantics<parallel>, #tpu.dimension_semantics<parallel>], iteration_bounds = array<i64: 2, 1>, scalar_prefetch = 0 : i64, scratch_operands = 0 : i64, tpu.core_type = #tpu.core_type<tc>, window_params = [{transform_indices = @transform_0, window_bounds = array<i64: 1, 128, 8>}, {pipeline_mode = #tpu.pipeline_mode<synchronous>, transform_indices = @transform_1, window_bounds = array<i64: 8, 16>}, {pipeline_mode = #tpu.pipeline_mode<synchronous>, transform_indices = @transform_2, window_bounds = array<i64: 1, 16>}, {pipeline_mode = #tpu.pipeline_mode<synchronous>, transform_indices = @transform_3, window_bounds = array<i64: 16, 32>}, {pipeline_mode = #tpu.pipeline_mode<synchronous>, transform_indices = @transform_4, window_bounds = array<i64: 1, 32>}, {transform_indices = @transform_5, window_bounds = array<i64: 1, 32, 8>}]} {
    %c0 = arith.constant 0 : index
    %c0_0 = arith.constant 0 : index
    %c0_1 = arith.constant 0 : index
    %0 = vector.load %arg2[%c0, %c0_0, %c0_1] : memref<1x128x8xbf16, #tpu.memory_space<vmem>>, vector<1x128x8xbf16>
    %1 = vector.shape_cast %0 : vector<1x128x8xbf16> to vector<128x8xbf16>
    %c0_2 = arith.constant 0 : index
    %c0_3 = arith.constant 0 : index
    %2 = vector.load %arg3[%c0_2, %c0_3] : memref<8x16xbf16, #tpu.memory_space<vmem>>, vector<8x16xbf16>
    %c0_4 = arith.constant 0 : index
    %c0_5 = arith.constant 0 : index
    %3 = vector.load %arg4[%c0_4, %c0_5] : memref<1x16xf32, #tpu.memory_space<vmem>>, vector<1x16xf32>
    %cst = arith.constant dense<0.000000e+00> : vector<128x16xf32>
    %4 = tpu.matmul %1, %2, %cst {dimension_numbers = #tpu.dot_dimension_numbers<[1], [0], [0], [1], [0, 0, 1, 1], [], []>} : vector<128x8xbf16>, vector<8x16xbf16>, vector<128x16xf32> -> vector<128x16xf32>
    %5 = vector.broadcast %3 : vector<1x16xf32> to vector<128x16xf32>
    %6 = arith.addf %4, %5 : vector<128x16xf32>
    %cst_6 = arith.constant 0.000000e+00 : f32
    %7 = vector.broadcast %cst_6 : f32 to vector<128x16xf32>
    %8 = arith.maximumf %6, %7 : vector<128x16xf32>
    %c0_7 = arith.constant 0 : index
    %c0_8 = arith.constant 0 : index
    %9 = vector.load %arg5[%c0_7, %c0_8] : memref<16x32xbf16, #tpu.memory_space<vmem>>, vector<16x32xbf16>
    %c0_9 = arith.constant 0 : index
    %c0_10 = arith.constant 0 : index
    %10 = vector.load %arg6[%c0_9, %c0_10] : memref<1x32xf32, #tpu.memory_space<vmem>>, vector<1x32xf32>
    %11 = arith.truncf %8 : vector<128x16xf32> to vector<128x16xbf16>
    %cst_11 = arith.constant dense<0.000000e+00> : vector<128x32xf32>
    %12 = tpu.matmul %11, %9, %cst_11 {dimension_numbers = #tpu.dot_dimension_numbers<[1], [0], [0], [1], [0, 0, 1, 1], [], []>} : vector<128x16xbf16>, vector<16x32xbf16>, vector<128x32xf32> -> vector<128x32xf32>
    %13 = vector.broadcast %10 : vector<1x32xf32> to vector<128x32xf32>
    %14 = arith.addf %12, %13 : vector<128x32xf32>
    %cst_12 = arith.constant 0.000000e+00 : f32
    %15 = vector.broadcast %cst_12 : f32 to vector<128x32xf32>
    %16 = arith.maximumf %14, %15 : vector<128x32xf32>
    %17 = vector.shape_cast %16 : vector<128x32xf32> to vector<8x16x32xf32>
    %cst_13 = arith.constant dense<0xFF800000> : vector<8x32xf32>
    %18 = vector.multi_reduction <maximumf>, %17, %cst_13 [1] : vector<8x16x32xf32> to vector<8x32xf32>
    %19 = tpu.transpose %18, [1, 0] : vector<8x32xf32> -> vector<32x8xf32>
    %c0_14 = arith.constant 0 : index
    %c0_15 = arith.constant 0 : index
    %c0_16 = arith.constant 0 : index
    %20 = vector.load %arg7[%c0_14, %c0_15, %c0_16] : memref<1x32x8xf32, #tpu.memory_space<vmem>>, vector<1x32x8xf32>
    %21 = vector.shape_cast %20 : vector<1x32x8xf32> to vector<32x8xf32>
    %22 = vector.shape_cast %19 : vector<32x8xf32> to vector<1x32x8xf32>
    tpu.vector_store %arg7[%c0_14, %c0_15, %c0_16], %22 {strides = array<i32>} : memref<1x32x8xf32, #tpu.memory_space<vmem>>, vector<1x32x8xf32>,
    return
  }
  func.func @transform_0(%arg0: i32, %arg1: i32) -> (i32, i32, i32) {
    %c0_i32 = arith.constant 0 : i32
    %c0_i32_0 = arith.constant 0 : i32
    return %arg0, %arg1, %c0_i32 : i32, i32, i32
  }
  func.func @transform_1(%arg0: i32, %arg1: i32) -> (i32, i32) {
    %c0_i32 = arith.constant 0 : i32
    %c0_i32_0 = arith.constant 0 : i32
    %c0_i32_1 = arith.constant 0 : i32
    return %c0_i32, %c0_i32_0 : i32, i32
  }
  func.func @transform_2(%arg0: i32, %arg1: i32) -> (i32, i32) {
    %c0_i32 = arith.constant 0 : i32
    %c0_i32_0 = arith.constant 0 : i32
    %c0_i32_1 = arith.constant 0 : i32
    return %c0_i32, %c0_i32_0 : i32, i32
  }
  func.func @transform_3(%arg0: i32, %arg1: i32) -> (i32, i32) {
    %c0_i32 = arith.constant 0 : i32
    %c0_i32_0 = arith.constant 0 : i32
    %c0_i32_1 = arith.constant 0 : i32
    return %c0_i32, %c0_i32_0 : i32, i32
  }
  func.func @transform_4(%arg0: i32, %arg1: i32) -> (i32, i32) {
    %c0_i32 = arith.constant 0 : i32
    %c0_i32_0 = arith.constant 0 : i32
    %c0_i32_1 = arith.constant 0 : i32
    return %c0_i32, %c0_i32_0 : i32, i32
  }
  func.func @transform_5(%arg0: i32, %arg1: i32) -> (i32, i32, i32) {
    %c0_i32 = arith.constant 0 : i32
    %c0_i32_0 = arith.constant 0 : i32
    return %arg0, %c0_i32, %arg1 : i32, i32, i32
  }
}

</mosaic_0001>

<bundles_post_ra>
// kernel: custom-call.12
= control target key start
LH: loop header
LB: loop body
LE: loop exit
PB: predicated region body
PF: predicated region fallthrough
CT: control target
= control target key end

     0   :  { %s6_s0 = inlined_call_operand.vmem [shape: f32[2,32], index: 0, kind: output, shape index: {}]  }

// kernel: a_call__.3
= control target key start
LH: loop header
LB: loop body
LE: loop exit
PB: predicated region body
PF: predicated region fallthrough
CT: control target
= control target key end

     0   :  { %s457_s9 = smov 0   ;;  %s459_s10 = smov 0   ;;  %s497_s0 = inlined_call_operand.vmem [shape: f32[2,8,3], index: 0, kind: input, shape index: {}]   ;;  %s498_s1 = inlined_call_operand.vmem [shape: f32[2,3,32], index: 1, kind: input, shape index: {}]   ;;  %s499_s2 = inlined_call_operand.vmem [shape: f32[2,8,32], index: 2, kind: output, shape index: {}]  }
   0x1   :  { %s461_s11 = smov 0  }
   0x2 LB: > { %s24_s12 = sadd.s32 1, %s434_s10  ;;  %p375_p0 = scmp.ge.s32.totalorder %s438_s11, 1  ;;  %s438_s11 = sphi %s461_s11, %s12_s11   ;;  %s434_s10 = sphi %s459_s10, %s501_s10   ;;  %s430_s9 = sphi %s457_s9, %s500_s9  }
   0x3   : > { %p26_p1 = scmp.ge.s32.totalorder %s24_s12, 2  ;;  %p139_p2 = scmp.lt.s32.totalorder %s438_s11, 3 }
   0x5   : > { %s503_s12 = smov (%p26_p1, %s24_s12), 0  ;;  %p140_p3 = pnand %p375_p0, %p139_p2 }
   0x6   : > { %p169_p4 = scmp.lt.s32.totalorder (!%p140_p3), %s430_s9, 1  ;;  %v440_v0 = vmov (!%p140_p3), 0.0   ;;  %vm441_vm0 = vmmov (!%p140_p3), 0   ;;  %vm193_vm1 = vcmask (!%p140_p3), 1042432   ;;  %vm189_vm2 = vcmask (!%p140_p3), 23552  }
   0x7   : > { %143 = sbr.rel (%p140_p3) target bundleno = 238 (0xee), region = 28  ;;  %385 = vmatprep.subr.mxu0 (!%p140_p3), %v440_v0  ;;  %387 = vmatprep.mubr.msk.f32.mxu0 (!%p140_p3), %vm441_vm0, %v440_v0  ;;  %vm272_vm3 = vcmask (!%p140_p3), 256000   ;;  %vm283_vm4 = vcmask (!%p140_p3), 261120  }
   0xe   : > { %s505_s9 = smov (!%p169_p4, %s430_s9), 1 }
   0xf   : > { %s377_s13 = sshll.u32 %s505_s9, 2  ;;  %s376_s14 = sshll.u32 %s505_s9, 3 }
  0x10   : > { %s179_s17 = scalar_lea.vmem %s498_s1, %s377_s13  ;;  %s175_s20 = scalar_lea.vmem %s497_s0, %s376_s14 }
  0x11   : > { %v188_v1 = vld [vmem:[%s179_s17] sm:$0x7]  ;;  %s186_s23 = scalar_lea.vmem %s499_s2, %s376_s14 }
  0x12   : > { %v187_v2 = vld [vmem:[%s175_s20] sm:$0xff]  ;;  %386 = vmatpush3.msk.msra.mxu0 %vm193_vm1, %v188_v1  ;;  %v271_v5 = vmul.f32 %v188_v1, %v188_v1 }
  0x13   : > { %v267_v3 = vmul.f32 %v187_v2, %v187_v2  ;;  %388 = vmatmul.mubr.msk.f32.vlgmr.msra.gmra.mrb[0].mxu0 %vm189_vm2, %v187_v2 }
  0x14   : > { %v273_v6 = vsel %vm272_vm3, %v271_v5, 0.0 }
  0x15   : > { %v268_v4 = vsel %vm189_vm2, %v267_v3, 0.0  ;;  %v274_v7 = vrot.slane %v273_v6, 4 }
  0x16   : > { %269 = vadd.xlane.f32.xlu0 %v268_v4 }
  0x17   : > { %v275_v8 = vadd.f32 %v274_v7, %v273_v6 }
  0x19   : > { %v276_v9 = vrot.slane %v275_v8, 2 }
  0x1b   : > { %v277_v10 = vadd.f32 %v276_v9, %v275_v8 }
  0x1d   : > { %v278_v11 = vrot.slane %v277_v10, 1 }
  0x1f   : > { %v279_v16 = vadd.f32 %v278_v11, %v277_v10 }
  0xa3   : > { %v270_v13 = vpop.xlane.xlu0 %269 }
  0xe6   : > { %v263_v12 = vpop.f32.mrb[0].mxu0 }
  0xe7   : > { %v280_v14 = vmul.f32 2.0, %v263_v12  ;;  %v389_v15 = vpop.f32.mrb[1].mxu0 }
  0xe9   : > { %v281_v17 = vsub.f32 %v270_v13, %v280_v14 }
  0xeb   : > { %v282_v18 = vadd.f32 %v281_v17, %v279_v16 }
  0xed   : > { %284 = vst.msk [vmem:[%s186_s23] sm:$0xff] %vm283_vm4, %v282_v18 }
  0xee PF: > { %s12_s11 = sadd.s32 1, %s438_s11   ;;  %s500_s9 = smov %s434_s10 }
  0xef   : > { %p9_p5 = scmp.ge.s32.totalorder %s12_s11, 4   ;;  %s501_s10 = smov %s503_s12 }
  0xf1   :  { %11 = sbr.rel (!%p9_p5) target bundleno = 2 (0x2), region = 61 }

// kernel: a_call__.4
= control target key start
LH: loop header
LB: loop body
LE: loop exit
PB: predicated region body
PF: predicated region fallthrough
CT: control target
= control target key end

     0   :  { %s835_s18 = smov 0   ;;  %s837_s19 = smov 0   ;;  %s907_s0 = inlined_call_operand.vmem [shape: bf16[2,64,8], index: 0, kind: input, shape index: {}]   ;;  %s908_s1 = inlined_call_operand.vmem [shape: bf16[8,16], index: 1, kind: input, shape index: {}]   ;;  %s909_s2 = inlined_call_operand.vmem [shape: f32[1,16], index: 2, kind: input, shape index: {}]   ;;  %s910_s3 = inlined_call_operand.vmem [shape: bf16[16,32], index: 3, kind: input, shape index: {}]   ;;  %s911_s4 = inlined_call_operand.vmem [shape: f32[1,32], index: 4, kind: input, shape index: {}]   ;;  %s912_s5 = inlined_call_operand.vmem [shape: f32[2,32,8], index: 5, kind: output, shape index: {}]  }
   0x1   :  { %s839_s20 = smov 0  }
   0x2 LB: > { %s27_s21 = sadd.s32 1, %s799_s19  ;;  %p696_p0 = scmp.ge.s32.totalorder %s803_s20, 1  ;;  %s803_s20 = sphi %s839_s20, %s15_s20   ;;  %s799_s19 = sphi %s837_s19, %s914_s19   ;;  %s795_s18 = sphi %s835_s18, %s913_s18  }
   0x3   : > { %p29_p1 = scmp.ge.s32.totalorder %s27_s21, 2  ;;  %p208_p2 = scmp.lt.s32.totalorder %s803_s20, 3 }
   0x5   : > { %s916_s21 = smov (%p29_p1, %s27_s21), 0  ;;  %p209_p3 = pnand %p696_p0, %p208_p2 }
   0x6   : > { %v270_v0 = vld [vmem:[%s908_s1] sm:$0xf] (!%p209_p3)  ;;  %vm311_vm0 = vcmask (!%p209_p3), 1043456   ;;  %p244_p4 = scmp.lt.s32.totalorder (!%p209_p3), %s795_s18, 1  ;;  %vm298_vm1 = vcmask (!%p209_p3), 64512   ;;  %vm407_vm2 = vcmask (!%p209_p3), 130048  }
   0x7   : > { %212 = sbr.rel (%p209_p3) target bundleno = 628 (0x274), region = 40  ;;  %750 = vmatprep.subr.msk.bf16.mxu0 (!%p209_p3), %vm311_vm0, %v270_v0  ;;  %v313_v1 = vsel (!%p209_p3), %vm311_vm0, %v270_v0, 0  ;;  %v780_v6 = vld [vmem:[%s910_s3] sm:$0xff] (!%p209_p3)   ;;  %vm493_vm3 = vcmask (!%p209_p3), 261120   ;;  %vm558_vm4 = vcmask (!%p209_p3), 1041409   ;;  %vm560_vm5 = vcmask (!%p209_p3), 1042434  }
   0x8   : > { %731 = vmatpush3.bf16.msra.mxu0 (!%p209_p3), %v313_v1  ;;  %740 = vmatprep.subr.bf16.mxu1 (!%p209_p3), %v780_v6  ;;  %v701_v7 = vld [vmem:[%s909_s2] ss:$0 sm:$0xff] (!%p209_p3)  ;;  %vm562_vm6 = vcmask (!%p209_p3), 1043459   ;;  %vm564_vm7 = vcmask (!%p209_p3), 1044484   ;;  %vm566_vm8 = vcmask (!%p209_p3), 1045509   ;;  %vm568_vm9 = vcmask (!%p209_p3), 1046534  }
   0x9   : > { %741 = vmatpush3.bf16.msra.mxu1 (!%p209_p3), %v780_v6  ;;  %v710_v36 = vld [vmem:[%s911_s4] ss:$0 sm:$0xff] (!%p209_p3)  ;;  %vm570_vm10 = vcmask (!%p209_p3), 1047559  }
   0xe   : > { %s918_s18 = smov (!%p244_p4, %s795_s18), 1 }
   0xf   : > { %s718_s24 = sshll.u32 %s918_s18, 5 }
  0x10   : > { %s251_s27 = scalar_lea.vmem %s907_s0, %s718_s24  ;;  %s260_s11 = scalar_lea.vmem %s912_s5, %s718_s24 }
  0x11   : > { %v776_v2 = vld [vmem:[%s251_s27] sm:$0xff]   ;;  %v777_v3 = vld [vmem:[%s251_s27 + $0x8] sm:$0xff]   ;;  %v778_v4 = vld [vmem:[%s251_s27 + $0x10] sm:$0xff]  }
  0x12   : > { %732 = vmatprep.mubr.msk.bf16.mxu0 %vm298_vm1, %v776_v2  ;;  %v779_v5 = vld [vmem:[%s251_s27 + $0x18] sm:$0xff]  }
  0x13   : > { %733 = vmatmul.mubr.msk.bf16.vlgmr.msra.gmra.mrb[0].mxu0 %vm298_vm1, %v777_v3 }
  0x14   : > { %736 = vmatprep.mubr.msk.bf16.mxu0 %vm298_vm1, %v778_v4 }
  0x1b   : > { %737 = vmatmul.mubr.msk.bf16.gmra.mrb[4].mxu0 %vm298_vm1, %v779_v5 }
  0xe6   : > { %v734_v8 = vpop.f32.mrb[0].mxu0 }
  0xe7   : > { %v358_v9 = vadd.f32 %v734_v8, %v701_v7  ;;  %v349_v10 = vpop.f32.mrb[1].mxu0 }
  0xe8   : > { %v350_v11 = vadd.f32 %v701_v7, %v349_v10  ;;  %v735_v12 = vpop.f32.mrb[2].mxu0 }
  0xe9   : > { %v361_v13 = vadd.f32 %v735_v12, %v701_v7  ;;  %v352_v14 = vpop.f32.mrb[3].mxu0  ;;  %v382_v16 = vmax.f32 %v358_v9, 0.0 }
  0xea   : > { %v353_v15 = vadd.f32 %v701_v7, %v352_v14  ;;  %v380_v18 = vmax.f32 %v350_v11, 0.0 }
  0xeb   : > { %v383_v17 = vmax.f32 %v361_v13, 0.0 }
  0xec   : > { %v381_v19 = vmax.f32 %v353_v15, 0.0 }
  0xed   : > { %v392_v20 = vpack.c.bf16 %v383_v17, %v382_v16 }
  0xee   : > { %v738_v21 = vpop.f32.mrb[4].mxu0  ;;  %v391_v22 = vpack.c.bf16 %v381_v19, %v380_v18 }
  0xef   : > { %v374_v23 = vadd.f32 %v738_v21, %v701_v7  ;;  %v365_v24 = vpop.f32.mrb[5].mxu0 }
  0xf0   : > { %v366_v25 = vadd.f32 %v701_v7, %v365_v24  ;;  %v739_v26 = vpop.f32.mrb[6].mxu0  ;;  %742 = vmatprep.mubr.msk.bf16.mxu1 %vm407_vm2, %v391_v22 }
  0xf1   : > { %v377_v27 = vadd.f32 %v739_v26, %v701_v7  ;;  %v368_v28 = vpop.f32.mrb[7].mxu0  ;;  %743 = vmatmul.mubr.msk.bf16.vlgmr.msra.gmra.mrb[0].mxu1 %vm407_vm2, %v392_v20  ;;  %v386_v30 = vmax.f32 %v374_v23, 0.0 }
  0xf2   : > { %v369_v29 = vadd.f32 %v701_v7, %v368_v28  ;;  %v384_v32 = vmax.f32 %v366_v25, 0.0 }
  0xf3   : > { %v387_v31 = vmax.f32 %v377_v27, 0.0 }
  0xf4   : > { %v385_v33 = vmax.f32 %v369_v29, 0.0 }
  0xf5   : > { %v394_v34 = vpack.c.bf16 %v387_v31, %v386_v30 }
  0xf6   : > { %v393_v35 = vpack.c.bf16 %v385_v33, %v384_v32 }
  0xf8   : > { %746 = vmatprep.mubr.msk.bf16.mxu1 %vm407_vm2, %v393_v35 }
  0xf9   : > { %747 = vmatmul.mubr.msk.bf16.gmra.mrb[4].mxu1 %vm407_vm2, %v394_v34 }
 0x1c4   : > { %v744_v37 = vpop.f32.mrb[0].mxu1 }
 0x1c5   : > { %v463_v38 = vadd.f32 %v744_v37, %v710_v36  ;;  %v454_v39 = vpop.f32.mrb[1].mxu1 }
 0x1c6   : > { %v455_v40 = vadd.f32 %v710_v36, %v454_v39  ;;  %v745_v41 = vpop.f32.mrb[2].mxu1 }
 0x1c7   : > { %v487_v42 = vmax.f32 %v463_v38, 0.0  ;;  %v466_v43 = vadd.f32 %v745_v41, %v710_v36  ;;  %v457_v44 = vpop.f32.mrb[3].mxu1 }
 0x1c8   : > { %v485_v45 = vmax.f32 %v455_v40, 0.0  ;;  %v458_v46 = vadd.f32 %v710_v36, %v457_v44 }
 0x1c9   : > { %v508_v47 = vsel %vm493_vm3, %v487_v42, -inf  ;;  %v488_v48 = vmax.f32 %v466_v43, 0.0 }
 0x1ca   : > { %v509_v49 = vrot.slane %v508_v47, 4  ;;  %v494_v50 = vsel %vm493_vm3, %v485_v45, -inf  ;;  %v486_v51 = vmax.f32 %v458_v46, 0.0 }
 0x1cb   : > { %v495_v52 = vrot.slane %v494_v50, 4  ;;  %v515_v53 = vsel %vm493_vm3, %v488_v48, -inf }
 0x1cc   : > { %v510_v54 = vmax.f32 %v508_v47, %v509_v49  ;;  %v516_v55 = vrot.slane %v515_v53, 4  ;;  %v501_v56 = vsel %vm493_vm3, %v486_v51, -inf  ;;  %v748_v57 = vpop.f32.mrb[4].mxu1 }
 0x1cd   : > { %v496_v58 = vmax.f32 %v494_v50, %v495_v52  ;;  %v502_v59 = vrot.slane %v501_v56, 4  ;;  %v479_v60 = vadd.f32 %v748_v57, %v710_v36  ;;  %v470_v61 = vpop.f32.mrb[5].mxu1 }
 0x1ce   : > { %v511_v62 = vrot.slane %v510_v54, 2  ;;  %v517_v63 = vmax.f32 %v515_v53, %v516_v55  ;;  %v471_v0 = vadd.f32 %v710_v36, %v470_v61  ;;  %v749_v1 = vpop.f32.mrb[6].mxu1 }
 0x1cf   : > { %v497_v2 = vrot.slane %v496_v58, 2  ;;  %v503_v3 = vmax.f32 %v501_v56, %v502_v59  ;;  %v491_v4 = vmax.f32 %v479_v60, 0.0  ;;  %v482_v5 = vadd.f32 %v749_v1, %v710_v36  ;;  %v473_v6 = vpop.f32.mrb[7].mxu1 }
 0x1d0   : > { %v512_v7 = vmax.f32 %v510_v54, %v511_v62  ;;  %v518_v8 = vrot.slane %v517_v63, 2  ;;  %v489_v9 = vmax.f32 %v471_v0, 0.0  ;;  %v474_v10 = vadd.f32 %v710_v36, %v473_v6 }
 0x1d1   : > { %v498_v11 = vmax.f32 %v496_v58, %v497_v2  ;;  %v504_v12 = vrot.slane %v503_v3, 2  ;;  %v536_v13 = vsel %vm493_vm3, %v491_v4, -inf  ;;  %v492_v14 = vmax.f32 %v482_v5, 0.0 }
 0x1d2   : > { %v519_v15 = vmax.f32 %v517_v63, %v518_v8  ;;  %v537_v16 = vrot.slane %v536_v13, 4  ;;  %v522_v17 = vsel %vm493_vm3, %v489_v9, -inf  ;;  %v513_v22 = vrot.slane %v512_v7, 1 }
 0x1d3   : > { %v499_v18 = vrot.slane %v498_v11, 1  ;;  %v505_v19 = vmax.f32 %v503_v3, %v504_v12  ;;  %v523_v20 = vrot.slane %v522_v17, 4  ;;  %v543_v21 = vsel %vm493_vm3, %v492_v14, -inf }
 0x1d4   : > { %v538_v23 = vmax.f32 %v536_v13, %v537_v16  ;;  %v544_v24 = vrot.slane %v543_v21, 4  ;;  %v520_v25 = vrot.slane %v519_v15, 1  ;;  %v490_v28 = vmax.f32 %v474_v10, 0.0 }
 0x1d5   : > { %v506_v26 = vrot.slane %v505_v19, 1  ;;  %v524_v27 = vmax.f32 %v522_v17, %v523_v20  ;;  %v500_v29 = vmax.f32 %v498_v11, %v499_v18  ;;  %v514_v35 = vmax.f32 %v512_v7, %v513_v22 }
 0x1d6   : > { %v545_v30 = vmax.f32 %v543_v21, %v544_v24  ;;  %v539_v32 = vrot.slane %v538_v23, 2  ;;  %v529_v34 = vsel %vm493_vm3, %v490_v28, -inf  ;;  %v521_v38 = vmax.f32 %v519_v15, %v520_v25 }
 0x1d7   : > { %v507_v31 = vmax.f32 %v505_v19, %v506_v26  ;;  %v525_v33 = vrot.slane %v524_v27, 2  ;;  %v530_v37 = vrot.slane %v529_v34, 4 }
 0x1d8   : > { %v546_v36 = vrot.slane %v545_v30, 2  ;;  %v540_v43 = vmax.f32 %v538_v23, %v539_v32 }
 0x1d9   : > { %v559_v39 = vsel %vm558_vm4, %v507_v31, %v500_v29  ;;  %v526_v40 = vmax.f32 %v524_v27, %v525_v33  ;;  %v531_v41 = vmax.f32 %v529_v34, %v530_v37 }
 0x1da   : > { %v561_v42 = vsel %vm560_vm5, %v514_v35, %v559_v39  ;;  %v547_v46 = vmax.f32 %v545_v30, %v546_v36  ;;  %v541_v50 = vrot.slane %v540_v43, 1 }
 0x1db   : > { %v527_v44 = vrot.slane %v526_v40, 1  ;;  %v563_v45 = vsel %vm562_vm6, %v521_v38, %v561_v42  ;;  %v532_v47 = vrot.slane %v531_v41, 2 }
 0x1dc   : > { %v548_v53 = vrot.slane %v547_v46, 1  ;;  %v542_v55 = vmax.f32 %v540_v43, %v541_v50 }
 0x1dd   : > { %v528_v48 = vmax.f32 %v526_v40, %v527_v44  ;;  %v533_v49 = vmax.f32 %v531_v41, %v532_v47 }
 0x1de   : > { %v549_v56 = vmax.f32 %v547_v46, %v548_v53 }
 0x1df   : > { %v565_v51 = vsel %vm564_vm7, %v528_v48, %v563_v45  ;;  %v534_v52 = vrot.slane %v533_v49, 1 }
 0x1e1   : > { %v535_v54 = vmax.f32 %v533_v49, %v534_v52 }
 0x1e3   : > { %v567_v57 = vsel %vm566_vm8, %v535_v54, %v565_v51 }
 0x1e4   : > { %v569_v58 = vsel %vm568_vm9, %v542_v55, %v567_v57 }
 0x1e5   : > { %v571_v59 = vsel %vm570_vm10, %v549_v56, %v569_v58 }
 0x1e6   : > { %573 = vxpose.xlu0.b32.start.end [1/1] (short) (narrow) %v571_v59, 32 }
 0x266   : > { %v589_v60 = vpop.trf.xlu0 }
 0x267   : > { %605 = vst.msk [vmem:[%s260_s11] sm:$0xff] %vm298_vm1, %v589_v60 }
 0x26a   : > { %v590_v61 = vpop.trf.xlu0 }
 0x26b   : > { %606 = vst.msk [vmem:[%s260_s11 + $0x8] sm:$0xff] %vm298_vm1, %v590_v61 }
 0x26e   : > { %v591_v62 = vpop.trf.xlu0 }
 0x26f   : > { %607 = vst.msk [vmem:[%s260_s11 + $0x10] sm:$0xff] %vm298_vm1, %v591_v62 }
 0x272   : > { %v592_v63 = vpop.trf.xlu0 }
 0x273   : > { %608 = vst.msk [vmem:[%s260_s11 + $0x18] sm:$0xff] %vm298_vm1, %v592_v63 }
 0x274 PF: > { %s15_s20 = sadd.s32 1, %s803_s20   ;;  %s913_s18 = smov %s799_s19 }
 0x275   : > { %p12_p5 = scmp.ge.s32.totalorder %s15_s20, 4   ;;  %s914_s19 = smov %s916_s21 }
 0x277   :  { %14 = sbr.rel (!%p12_p5) target bundleno = 2 (0x2), region = 70 }

// kernel: a_call__.5
= control target key start
LH: loop header
LB: loop body
LE: loop exit
PB: predicated region body
PF: predicated region fallthrough
CT: control target
= control target key end

     0   :  { %s1027_s18 = smov 0   ;;  %s1029_s19 = smov 0   ;;  %s1131_s0 = inlined_call_operand.vmem [shape: bf16[2,128,8], index: 0, kind: input, shape index: {}]   ;;  %s1132_s1 = inlined_call_operand.vmem [shape: bf16[8,16], index: 1, kind: input, shape index: {}]   ;;  %s1133_s2 = inlined_call_operand.vmem [shape: f32[1,16], index: 2, kind: input, shape index: {}]   ;;  %s1134_s3 = inlined_call_operand.vmem [shape: bf16[16,32], index: 3, kind: input, shape index: {}]   ;;  %s1135_s4 = inlined_call_operand.vmem [shape: f32[1,32], index: 4, kind: input, shape index: {}]   ;;  %s1136_s5 = inlined_call_operand.vmem [shape: f32[2,32,8], index: 5, kind: output, shape index: {}]  }
   0x1   :  { %s1031_s20 = smov 0  }
   0x2 LB: > { %s27_s21 = sadd.s32 1, %s991_s19  ;;  %p848_p0 = scmp.ge.s32.totalorder %s995_s20, 1  ;;  %s995_s20 = sphi %s1031_s20, %s15_s20   ;;  %s991_s19 = sphi %s1029_s19, %s1138_s19   ;;  %s987_s18 = sphi %s1027_s18, %s1137_s18  }
   0x3   : > { %p29_p1 = scmp.ge.s32.totalorder %s27_s21, 2  ;;  %p208_p2 = scmp.lt.s32.totalorder %s995_s20, 3 }
   0x5   : > { %s1140_s21 = smov (%p29_p1, %s27_s21), 0  ;;  %p209_p3 = pnand %p848_p0, %p208_p2 }
   0x6   : > { %v278_v0 = vld [vmem:[%s1132_s1] sm:$0xf] (!%p209_p3)  ;;  %vm351_vm0 = vcmask (!%p209_p3), 1043456   ;;  %p244_p4 = scmp.lt.s32.totalorder (!%p209_p3), %s987_s18, 1  ;;  %vm326_vm1 = vcmask (!%p209_p3), 64512   ;;  %vm491_vm2 = vcmask (!%p209_p3), 130048  }
   0x7   : > { %212 = sbr.rel (%p209_p3) target bundleno = 643 (0x283), region = 40  ;;  %938 = vmatprep.subr.msk.bf16.mxu0 (!%p209_p3), %vm351_vm0, %v278_v0  ;;  %v353_v1 = vsel (!%p209_p3), %vm351_vm0, %v278_v0, 0  ;;  %v972_v10 = vld [vmem:[%s1134_s3] sm:$0xff] (!%p209_p3)   ;;  %vm629_vm3 = vcmask (!%p209_p3), 261120   ;;  %vm710_vm4 = vcmask (!%p209_p3), 1041409   ;;  %vm712_vm5 = vcmask (!%p209_p3), 1042434  }
   0x8   : > { %903 = vmatpush3.bf16.msra.mxu0 (!%p209_p3), %v353_v1  ;;  %920 = vmatprep.subr.bf16.mxu1 (!%p209_p3), %v972_v10  ;;  %v853_v11 = vld [vmem:[%s1133_s2] ss:$0 sm:$0xff] (!%p209_p3)  ;;  %vm714_vm6 = vcmask (!%p209_p3), 1043459   ;;  %vm716_vm7 = vcmask (!%p209_p3), 1044484   ;;  %vm718_vm8 = vcmask (!%p209_p3), 1045509   ;;  %vm720_vm9 = vcmask (!%p209_p3), 1046534  }
   0x9   : > { %921 = vmatpush3.bf16.msra.mxu1 (!%p209_p3), %v972_v10  ;;  %vm722_vm10 = vcmask (!%p209_p3), 1047559  }
   0xe   : > { %s1142_s18 = smov (!%p244_p4, %s987_s18), 1 }
   0xf   : > { %s882_s24 = sshll.u32 %s1142_s18, 6  ;;  %s883_s9 = sshll.u32 %s1142_s18, 5 }
  0x10   : > { %s251_s27 = scalar_lea.vmem %s1131_s0, %s882_s24  ;;  %s260_s12 = scalar_lea.vmem %s1136_s5, %s883_s9 }
  0x11   : > { %v964_v2 = vld [vmem:[%s251_s27] sm:$0xff]   ;;  %v965_v3 = vld [vmem:[%s251_s27 + $0x8] sm:$0xff]   ;;  %v966_v4 = vld [vmem:[%s251_s27 + $0x10] sm:$0xff]  }
  0x12   : > { %904 = vmatprep.mubr.msk.bf16.mxu0 %vm326_vm1, %v964_v2  ;;  %v967_v5 = vld [vmem:[%s251_s27 + $0x18] sm:$0xff]   ;;  %v968_v6 = vld [vmem:[%s251_s27 + $0x20] sm:$0xff]   ;;  %v969_v7 = vld [vmem:[%s251_s27 + $0x28] sm:$0xff]  }
  0x13   : > { %905 = vmatmul.mubr.msk.bf16.vlgmr.msra.gmra.mrb[0].mxu0 %vm326_vm1, %v965_v3  ;;  %v970_v8 = vld [vmem:[%s251_s27 + $0x30] sm:$0xff]   ;;  %v971_v9 = vld [vmem:[%s251_s27 + $0x38] sm:$0xff]  }
  0x14   : > { %908 = vmatprep.mubr.msk.bf16.mxu0 %vm326_vm1, %v966_v4  ;;  %v1079_v4 = vld [vmem:[%s1135_s4] ss:$0 sm:$0xff] }
  0x1b   : > { %909 = vmatmul.mubr.msk.bf16.gmra.mrb[4].mxu0 %vm326_vm1, %v967_v5 }
  0x1c   : > { %912 = vmatprep.mubr.msk.bf16.mxu0 %vm326_vm1, %v968_v6 }
  0x23   : > { %913 = vmatmul.mubr.msk.bf16.gmra.mrb[8].mxu0 %vm326_vm1, %v969_v7 }
  0x24   : > { %916 = vmatprep.mubr.msk.bf16.mxu0 %vm326_vm1, %v970_v8 }
  0x2b   : > { %917 = vmatmul.mubr.msk.bf16.gmra.mrb[12].mxu0 %vm326_vm1, %v971_v9 }
  0xe6   : > { %v906_v12 = vpop.f32.mrb[0].mxu0 }
  0xe7   : > { %v398_v13 = vadd.f32 %v906_v12, %v853_v11  ;;  %v389_v14 = vpop.f32.mrb[1].mxu0 }
  0xe8   : > { %v390_v15 = vadd.f32 %v853_v11, %v389_v14  ;;  %v907_v16 = vpop.f32.mrb[2].mxu0 }
  0xe9   : > { %v401_v17 = vadd.f32 %v907_v16, %v853_v11  ;;  %v392_v18 = vpop.f32.mrb[3].mxu0  ;;  %v454_v20 = vmax.f32 %v398_v13, 0.0 }
  0xea   : > { %v393_v19 = vadd.f32 %v853_v11, %v392_v18  ;;  %v452_v22 = vmax.f32 %v390_v15, 0.0 }
  0xeb   : > { %v455_v21 = vmax.f32 %v401_v17, 0.0 }
  0xec   : > { %v453_v23 = vmax.f32 %v393_v19, 0.0 }
  0xed   : > { %v472_v24 = vpack.c.bf16 %v455_v21, %v454_v20 }
  0xee   : > { %v910_v25 = vpop.f32.mrb[4].mxu0  ;;  %v471_v26 = vpack.c.bf16 %v453_v23, %v452_v22 }
  0xef   : > { %v414_v27 = vadd.f32 %v910_v25, %v853_v11  ;;  %v405_v28 = vpop.f32.mrb[5].mxu0 }
  0xf0   : > { %v406_v29 = vadd.f32 %v853_v11, %v405_v28  ;;  %v911_v30 = vpop.f32.mrb[6].mxu0  ;;  %922 = vmatprep.mubr.msk.bf16.mxu1 %vm491_vm2, %v471_v26 }
  0xf1   : > { %v417_v31 = vadd.f32 %v911_v30, %v853_v11  ;;  %v408_v32 = vpop.f32.mrb[7].mxu0  ;;  %923 = vmatmul.mubr.msk.bf16.vlgmr.msra.gmra.mrb[0].mxu1 %vm491_vm2, %v472_v24  ;;  %v458_v34 = vmax.f32 %v414_v27, 0.0 }
  0xf2   : > { %v409_v33 = vadd.f32 %v853_v11, %v408_v32  ;;  %v456_v36 = vmax.f32 %v406_v29, 0.0 }
  0xf3   : > { %v459_v35 = vmax.f32 %v417_v31, 0.0 }
  0xf4   : > { %v457_v37 = vmax.f32 %v409_v33, 0.0 }
  0xf5   : > { %v474_v38 = vpack.c.bf16 %v459_v35, %v458_v34 }
  0xf6   : > { %v473_v39 = vpack.c.bf16 %v457_v37, %v456_v36  ;;  %v914_v40 = vpop.f32.mrb[8].mxu0 }
  0xf7   : > { %v430_v41 = vadd.f32 %v914_v40, %v853_v11  ;;  %v421_v42 = vpop.f32.mrb[9].mxu0 }
  0xf8   : > { %v422_v43 = vadd.f32 %v853_v11, %v421_v42  ;;  %v915_v44 = vpop.f32.mrb[10].mxu0  ;;  %926 = vmatprep.mubr.msk.bf16.mxu1 %vm491_vm2, %v473_v39 }
  0xf9   : > { %v433_v45 = vadd.f32 %v915_v44, %v853_v11  ;;  %v424_v46 = vpop.f32.mrb[11].mxu0  ;;  %927 = vmatmul.mubr.msk.bf16.gmra.mrb[4].mxu1 %vm491_vm2, %v474_v38  ;;  %v462_v48 = vmax.f32 %v430_v41, 0.0 }
  0xfa   : > { %v425_v47 = vadd.f32 %v853_v11, %v424_v46  ;;  %v460_v50 = vmax.f32 %v422_v43, 0.0 }
  0xfb   : > { %v463_v49 = vmax.f32 %v433_v45, 0.0 }
  0xfc   : > { %v461_v51 = vmax.f32 %v425_v47, 0.0 }
  0xfd   : > { %v476_v52 = vpack.c.bf16 %v463_v49, %v462_v48 }
  0xfe   : > { %v475_v53 = vpack.c.bf16 %v461_v51, %v460_v50  ;;  %v918_v54 = vpop.f32.mrb[12].mxu0 }
  0xff   : > { %v446_v55 = vadd.f32 %v918_v54, %v853_v11  ;;  %v437_v56 = vpop.f32.mrb[13].mxu0 }
 0x100   : > { %v438_v57 = vadd.f32 %v853_v11, %v437_v56  ;;  %v919_v58 = vpop.f32.mrb[14].mxu0  ;;  %930 = vmatprep.mubr.msk.bf16.mxu1 %vm491_vm2, %v475_v53 }
 0x101   : > { %v449_v59 = vadd.f32 %v919_v58, %v853_v11  ;;  %v440_v60 = vpop.f32.mrb[15].mxu0  ;;  %931 = vmatmul.mubr.msk.bf16.gmra.mrb[8].mxu1 %vm491_vm2, %v476_v52  ;;  %v466_v62 = vmax.f32 %v446_v55, 0.0 }
 0x102   : > { %v441_v61 = vadd.f32 %v853_v11, %v440_v60  ;;  %v464_v0 = vmax.f32 %v438_v57, 0.0 }
 0x103   : > { %v467_v63 = vmax.f32 %v449_v59, 0.0 }
 0x104   : > { %v465_v1 = vmax.f32 %v441_v61, 0.0 }
 0x105   : > { %v478_v2 = vpack.c.bf16 %v467_v63, %v466_v62 }
 0x106   : > { %v477_v3 = vpack.c.bf16 %v465_v1, %v464_v0 }
 0x108   : > { %934 = vmatprep.mubr.msk.bf16.mxu1 %vm491_vm2, %v477_v3 }
 0x109   : > { %935 = vmatmul.mubr.msk.bf16.gmra.mrb[12].mxu1 %vm491_vm2, %v478_v2 }
 0x1c4   : > { %v924_v5 = vpop.f32.mrb[0].mxu1 }
 0x1c5   : > { %v559_v6 = vadd.f32 %v924_v5, %v1079_v4  ;;  %v550_v7 = vpop.f32.mrb[1].mxu1 }
 0x1c6   : > { %v551_v8 = vadd.f32 %v1079_v4, %v550_v7  ;;  %v925_v9 = vpop.f32.mrb[2].mxu1 }
 0x1c7   : > { %v615_v10 = vmax.f32 %v559_v6, 0.0  ;;  %v562_v11 = vadd.f32 %v925_v9, %v1079_v4  ;;  %v553_v12 = vpop.f32.mrb[3].mxu1 }
 0x1c8   : > { %v613_v13 = vmax.f32 %v551_v8, 0.0  ;;  %v554_v14 = vadd.f32 %v1079_v4, %v553_v12 }
 0x1c9   : > { %v616_v15 = vmax.f32 %v562_v11, 0.0  ;;  %v639_v17 = vsel %vm629_vm3, %v615_v10, -inf }
 0x1ca   : > { %v614_v16 = vmax.f32 %v554_v14, 0.0  ;;  %v630_v19 = vsel %vm629_vm3, %v613_v13, -inf }
 0x1cb   : > { %v640_v18 = vsel %vm629_vm3, %v616_v15, -inf }
 0x1cc   : > { %v641_v20 = vmax.f32 %v639_v17, %v640_v18  ;;  %v631_v21 = vsel %vm629_vm3, %v614_v16, -inf  ;;  %v928_v22 = vpop.f32.mrb[4].mxu1 }
 0x1cd   : > { %v632_v23 = vmax.f32 %v630_v19, %v631_v21  ;;  %v575_v24 = vadd.f32 %v928_v22, %v1079_v4  ;;  %v566_v25 = vpop.f32.mrb[5].mxu1 }
 0x1ce   : > { %v642_v26 = vrot.slane %v641_v20, 4  ;;  %v567_v27 = vadd.f32 %v1079_v4, %v566_v25  ;;  %v929_v28 = vpop.f32.mrb[6].mxu1 }
 0x1cf   : > { %v633_v29 = vrot.slane %v632_v23, 4  ;;  %v619_v30 = vmax.f32 %v575_v24, 0.0  ;;  %v578_v31 = vadd.f32 %v929_v28, %v1079_v4  ;;  %v569_v32 = vpop.f32.mrb[7].mxu1 }
 0x1d0   : > { %v643_v33 = vmax.f32 %v641_v20, %v642_v26  ;;  %v617_v34 = vmax.f32 %v567_v27, 0.0  ;;  %v570_v35 = vadd.f32 %v1079_v4, %v569_v32 }
 0x1d1   : > { %v634_v36 = vmax.f32 %v632_v23, %v633_v29  ;;  %v620_v37 = vmax.f32 %v578_v31, 0.0  ;;  %v657_v41 = vsel %vm629_vm3, %v619_v30, -inf }
 0x1d2   : > { %v644_v38 = vrot.slane %v643_v33, 2  ;;  %v618_v39 = vmax.f32 %v570_v35, 0.0  ;;  %v648_v44 = vsel %vm629_vm3, %v617_v34, -inf }
 0x1d3   : > { %v635_v40 = vrot.slane %v634_v36, 2  ;;  %v658_v42 = vsel %vm629_vm3, %v620_v37, -inf }
 0x1d4   : > { %v645_v43 = vmax.f32 %v643_v33, %v644_v38  ;;  %v659_v45 = vmax.f32 %v657_v41, %v658_v42  ;;  %v649_v46 = vsel %vm629_vm3, %v618_v39, -inf  ;;  %v932_v47 = vpop.f32.mrb[8].mxu1 }
 0x1d5   : > { %v636_v48 = vmax.f32 %v634_v36, %v635_v40  ;;  %v650_v49 = vmax.f32 %v648_v44, %v649_v46  ;;  %v591_v50 = vadd.f32 %v932_v47, %v1079_v4  ;;  %v582_v51 = vpop.f32.mrb[9].mxu1 }
 0x1d6   : > { %v646_v52 = vrot.slane %v645_v43, 1  ;;  %v660_v53 = vrot.slane %v659_v45, 4  ;;  %v583_v54 = vadd.f32 %v1079_v4, %v582_v51  ;;  %v933_v55 = vpop.f32.mrb[10].mxu1 }
 0x1d7   : > { %v637_v56 = vrot.slane %v636_v48, 1  ;;  %v651_v57 = vrot.slane %v650_v49, 4  ;;  %v623_v58 = vmax.f32 %v591_v50, 0.0  ;;  %v594_v59 = vadd.f32 %v933_v55, %v1079_v4  ;;  %v585_v60 = vpop.f32.mrb[11].mxu1 }
 0x1d8   : > { %v647_v61 = vmax.f32 %v645_v43, %v646_v52  ;;  %v661_v62 = vmax.f32 %v659_v45, %v660_v53  ;;  %v621_v63 = vmax.f32 %v583_v54, 0.0  ;;  %v586_v0 = vadd.f32 %v1079_v4, %v585_v60 }
 0x1d9   : > { %v638_v1 = vmax.f32 %v636_v48, %v637_v56  ;;  %v652_v2 = vmax.f32 %v650_v49, %v651_v57  ;;  %v624_v3 = vmax.f32 %v594_v59, 0.0  ;;  %v675_v8 = vsel %vm629_vm3, %v623_v58, -inf }
 0x1da   : > { %v662_v5 = vrot.slane %v661_v62, 2  ;;  %v622_v6 = vmax.f32 %v586_v0, 0.0  ;;  %v666_v12 = vsel %vm629_vm3, %v621_v63, -inf }
 0x1db   : > { %v653_v7 = vrot.slane %v652_v2, 2  ;;  %v676_v9 = vsel %vm629_vm3, %v624_v3, -inf  ;;  %v711_v10 = vsel %vm710_vm4, %v647_v61, %v638_v1 }
 0x1dc   : > { %v663_v11 = vmax.f32 %v661_v62, %v662_v5  ;;  %v677_v13 = vmax.f32 %v675_v8, %v676_v9  ;;  %v667_v14 = vsel %vm629_vm3, %v622_v6, -inf  ;;  %v936_v15 = vpop.f32.mrb[12].mxu1 }
 0x1dd   : > { %v654_v16 = vmax.f32 %v652_v2, %v653_v7  ;;  %v668_v17 = vmax.f32 %v666_v12, %v667_v14  ;;  %v607_v18 = vadd.f32 %v936_v15, %v1079_v4  ;;  %v598_v19 = vpop.f32.mrb[13].mxu1 }
 0x1de   : > { %v664_v20 = vrot.slane %v663_v11, 1  ;;  %v678_v21 = vrot.slane %v677_v13, 4  ;;  %v599_v22 = vadd.f32 %v1079_v4, %v598_v19  ;;  %v937_v23 = vpop.f32.mrb[14].mxu1 }
 0x1df   : > { %v655_v24 = vrot.slane %v654_v16, 1  ;;  %v669_v25 = vrot.slane %v668_v17, 4  ;;  %v627_v26 = vmax.f32 %v607_v18, 0.0  ;;  %v610_v27 = vadd.f32 %v937_v23, %v1079_v4  ;;  %v601_v28 = vpop.f32.mrb[15].mxu1 }
 0x1e0   : > { %v679_v29 = vmax.f32 %v677_v13, %v678_v21  ;;  %v625_v30 = vmax.f32 %v599_v22, 0.0  ;;  %v602_v31 = vadd.f32 %v1079_v4, %v601_v28  ;;  %v665_v35 = vmax.f32 %v663_v11, %v664_v20 }
 0x1e1   : > { %v656_v32 = vmax.f32 %v654_v16, %v655_v24  ;;  %v670_v33 = vmax.f32 %v668_v17, %v669_v25  ;;  %v628_v34 = vmax.f32 %v610_v27, 0.0  ;;  %v693_v37 = vsel %vm629_vm3, %v627_v26, -inf }
 0x1e2   : > { %v680_v36 = vrot.slane %v679_v29, 2  ;;  %v626_v38 = vmax.f32 %v602_v31, 0.0  ;;  %v684_v40 = vsel %vm629_vm3, %v625_v30, -inf }
 0x1e3   : > { %v671_v39 = vrot.slane %v670_v33, 2  ;;  %v694_v41 = vsel %vm629_vm3, %v628_v34, -inf  ;;  %v713_v42 = vsel %vm712_vm5, %v656_v32, %v711_v10 }
 0x1e4   : > { %v681_v43 = vmax.f32 %v679_v29, %v680_v36  ;;  %v695_v44 = vmax.f32 %v693_v37, %v694_v41  ;;  %v685_v4 = vsel %vm629_vm3, %v626_v38, -inf  ;;  %v715_v45 = vsel %vm714_vm6, %v665_v35, %v713_v42 }
 0x1e5   : > { %v672_v46 = vmax.f32 %v670_v33, %v671_v39  ;;  %v686_v47 = vmax.f32 %v684_v40, %v685_v4 }
 0x1e6   : > { %v682_v48 = vrot.slane %v681_v43, 1  ;;  %v696_v49 = vrot.slane %v695_v44, 4 }
 0x1e7   : > { %v673_v50 = vrot.slane %v672_v46, 1  ;;  %v687_v51 = vrot.slane %v686_v47, 4 }
 0x1e8   : > { %v697_v52 = vmax.f32 %v695_v44, %v696_v49  ;;  %v683_v56 = vmax.f32 %v681_v43, %v682_v48 }
 0x1e9   : > { %v674_v53 = vmax.f32 %v672_v46, %v673_v50  ;;  %v688_v54 = vmax.f32 %v686_v47, %v687_v51 }
 0x1ea   : > { %v698_v55 = vrot.slane %v697_v52, 2 }
 0x1eb   : > { %v689_v57 = vrot.slane %v688_v54, 2  ;;  %v717_v58 = vsel %vm716_vm7, %v674_v53, %v715_v45 }
 0x1ec   : > { %v699_v59 = vmax.f32 %v697_v52, %v698_v55  ;;  %v719_v60 = vsel %vm718_vm8, %v683_v56, %v717_v58 }
 0x1ed   : > { %v690_v61 = vmax.f32 %v688_v54, %v689_v57 }
 0x1ee   : > { %v700_v62 = vrot.slane %v699_v59, 1 }
 0x1ef   : > { %v691_v63 = vrot.slane %v690_v61, 1 }
 0x1f0   : > { %v701_v1 = vmax.f32 %v699_v59, %v700_v62 }
 0x1f1   : > { %v692_v0 = vmax.f32 %v690_v61, %v691_v63 }
 0x1f3   : > { %v721_v2 = vsel %vm720_vm9, %v692_v0, %v719_v60 }
 0x1f4   : > { %v723_v3 = vsel %vm722_vm10, %v701_v1, %v721_v2 }
 0x1f5   : > { %725 = vxpose.xlu0.b32.start.end [1/1] (short) (narrow) %v723_v3, 32 }
 0x275   : > { %v741_v5 = vpop.trf.xlu0 }
 0x276   : > { %757 = vst.msk [vmem:[%s260_s12] sm:$0xff] %vm326_vm1, %v741_v5 }
 0x279   : > { %v742_v6 = vpop.trf.xlu0 }
 0x27a   : > { %758 = vst.msk [vmem:[%s260_s12 + $0x8] sm:$0xff] %vm326_vm1, %v742_v6 }
 0x27d   : > { %v743_v7 = vpop.trf.xlu0 }
 0x27e   : > { %759 = vst.msk [vmem:[%s260_s12 + $0x10] sm:$0xff] %vm326_vm1, %v743_v7 }
 0x281   : > { %v744_v8 = vpop.trf.xlu0 }
 0x282   : > { %760 = vst.msk [vmem:[%s260_s12 + $0x18] sm:$0xff] %vm326_vm1, %v744_v8 }
 0x283 PF: > { %s15_s20 = sadd.s32 1, %s995_s20   ;;  %s1137_s18 = smov %s991_s19 }
 0x284   : > { %p12_p5 = scmp.ge.s32.totalorder %s15_s20, 4   ;;  %s1138_s19 = smov %s1140_s21 }
 0x286   :  { %14 = sbr.rel (!%p12_p5) target bundleno = 2 (0x2), region = 70 }

</bundles_post_ra>
